<compile_context>
chip_gen: v7x
topology: tpu7x:2x2x1
jax: 0.10.0
libtpu: 0.0.40
codegen_flags: <defaults>
</compile_context>

<pallas_src>
import functools

import jax
import jax.numpy as jnp
from jax.experimental import pallas as pl
from jax.experimental.pallas import tpu as pltpu

IN_DIM = 240
HID_DIM = 256
OUT_DIM = 48


def _round_up(x, m):
    return ((x + m - 1) // m) * m


def mlp_kernel(x_ref, w1_ref, b1_ref, w2_ref, b2_ref, o_ref):
    # Cast x to bf16 in-kernel (VPU) -> fc1 on the MXU with f32 accumulation.
    x = x_ref[...].astype(jnp.bfloat16)
    h = jnp.dot(x, w1_ref[...], preferred_element_type=jnp.float32)
    h = jnp.maximum(h + b1_ref[...], 0.0)
    # Dropout(p=0.5): identity in eval mode (deterministic forward).
    # TODO(synk): training-mode dropout would use pltpu.prng_seed + prng_random_bits.
    out = jnp.dot(h.astype(jnp.bfloat16), w2_ref[...],
                  preferred_element_type=jnp.float32)
    o_ref[...] = (out + b2_ref[...]).astype(o_ref.dtype)


def prepare_params(w1, b1, w2, b2):
    """Cast matmul operands to bf16; biases stay f32, shaped (1, N) for broadcast."""
    return (w1.astype(jnp.bfloat16),
            b1.reshape(1, HID_DIM).astype(jnp.float32),
            w2.astype(jnp.bfloat16),
            b2.reshape(1, OUT_DIM).astype(jnp.float32))


@functools.partial(jax.jit, static_argnames=("block_m",))
def mlp_forward(x, w1, b1, w2, b2, *, block_m=2048):
    """x: (..., 240) f32 (flattened to (-1, 240) like the PyTorch view). Returns (B, 48) f32."""
    x2 = x.reshape(-1, IN_DIM)
    B = x2.shape[0]

    w1_p, b1_p, w2_p, b2_p = prepare_params(w1, b1, w2, b2)

    # cdiv-balanced batch tile (multiple of 8 sublanes).  Ensure >=2 grid steps
    # when B allows it so the "parallel" axis can shard across v7x's 2 TCs
    # (costs one ~0.35us extra step on single-core chips — negligible).
    ntiles = pl.cdiv(B, block_m)
    if B >= 16:
        ntiles = max(ntiles, 2)
    tm = _round_up(pl.cdiv(B, ntiles), 8)
    grid = (pl.cdiv(B, tm),)

    flops = 2 * B * (IN_DIM * HID_DIM + HID_DIM * OUT_DIM)
    bytes_accessed = (x2.size * 4 + w1_p.size * 2 + w2_p.size * 2
                      + b1_p.size * 4 + b2_p.size * 4 + B * OUT_DIM * 4)

    out = pl.pallas_call(
        mlp_kernel,
        out_shape=jax.ShapeDtypeStruct((B, OUT_DIM), jnp.float32),
        grid=grid,
        in_specs=[
            pl.BlockSpec((tm, IN_DIM), lambda i: (i, 0)),        # x: full K, no pad
            pl.BlockSpec((IN_DIM, HID_DIM), lambda i: (0, 0)),   # VMEM-resident weights
            pl.BlockSpec((1, HID_DIM), lambda i: (0, 0)),
            pl.BlockSpec((HID_DIM, OUT_DIM), lambda i: (0, 0)),
            pl.BlockSpec((1, OUT_DIM), lambda i: (0, 0)),
        ],
        out_specs=pl.BlockSpec((tm, OUT_DIM), lambda i: (i, 0)),
        compiler_params=pltpu.CompilerParams(
            dimension_semantics=("parallel",),          # megacore-shard the batch axis
            vmem_limit_bytes=32 * 1024 * 1024,          # footprint ~6 MiB at tm=2048
        ),
        cost_estimate=pl.CostEstimate(
            flops=flops, bytes_accessed=bytes_accessed, transcendentals=0),
    )(x2, w1_p, b1_p, w2_p, b2_p)

    return out


def init_params(key):
    """Deterministic PyTorch-style init: U(-1/sqrt(fan_in), 1/sqrt(fan_in))."""
    k1, k2, k3, k4 = jax.random.split(key, 4)
    bound1 = 1.0 / jnp.sqrt(float(IN_DIM))
    bound2 = 1.0 / jnp.sqrt(float(HID_DIM))
    w1 = jax.random.uniform(k1, (IN_DIM, HID_DIM), jnp.float32, -bound1, bound1)
    b1 = jax.random.uniform(k2, (HID_DIM,), jnp.float32, -bound1, bound1)
    w2 = jax.random.uniform(k3, (HID_DIM, OUT_DIM), jnp.float32, -bound2, bound2)
    b2 = jax.random.uniform(k4, (OUT_DIM,), jnp.float32, -bound2, bound2)
    return w1, b1, w2, b2


def _reference(x, w1, b1, w2, b2):
    # Mirrors the kernel's bf16-operand / f32-accumulate math (eval-mode
    # dropout == identity).
    def bf(v):
        return v.astype(jnp.bfloat16).astype(jnp.float32)
    h = jnp.maximum(bf(x) @ bf(w1) + b1, 0.0)
    return bf(h) @ bf(w2) + b2


if __name__ == "__main__":
    key = jax.random.PRNGKey(0)
    kx, kp = jax.random.split(key)
    w1, b1, w2, b2 = init_params(kp)

    # Case 1: batch that's a clean multiple of the sublane tile.
    B = 8
    x = jax.random.normal(kx, (B, IN_DIM), jnp.float32)
    out = jax.block_until_ready(mlp_forward(x, w1, b1, w2, b2))
    ref = _reference(x, w1, b1, w2, b2)
    assert out.shape == (B, OUT_DIM)
    assert jnp.allclose(out, ref, atol=1e-2, rtol=1e-2)

    # Case 2: ragged batch (exercises the masked last output block).
    B2 = 13
    x2 = jax.random.normal(jax.random.fold_in(kx, 1), (B2, IN_DIM), jnp.float32)
    out2 = jax.block_until_ready(mlp_forward(x2, w1, b1, w2, b2))
    ref2 = _reference(x2, w1, b1, w2, b2)
    assert out2.shape == (B2, OUT_DIM)
    assert jnp.allclose(out2, ref2, atol=1e-2, rtol=1e-2)

    print("KERNEL_OK")
</pallas_src>

<mosaic_0001>
module attributes {stable_mosaic.version = 11 : i64} {
  func.func @mlp_kernel(%arg0: i32, %arg1: memref<8x240xf32, #tpu.memory_space<vmem>>, %arg2: memref<240x256xbf16, #tpu.memory_space<vmem>>, %arg3: memref<1x256xf32, #tpu.memory_space<vmem>>, %arg4: memref<256x48xbf16, #tpu.memory_space<vmem>>, %arg5: memref<1x48xf32, #tpu.memory_space<vmem>>, %arg6: memref<8x48xf32, #tpu.memory_space<vmem>>) attributes {dimension_semantics = [#tpu.dimension_semantics<parallel>], iteration_bounds = array<i64: 1>, scalar_prefetch = 0 : i64, scratch_operands = 0 : i64, tpu.core_type = #tpu.core_type<tc>, window_params = [{transform_indices = @transform_0, window_bounds = array<i64: 8, 240>}, {pipeline_mode = #tpu.pipeline_mode<synchronous>, transform_indices = @transform_1, window_bounds = array<i64: 240, 256>}, {pipeline_mode = #tpu.pipeline_mode<synchronous>, transform_indices = @transform_2, window_bounds = array<i64: 1, 256>}, {pipeline_mode = #tpu.pipeline_mode<synchronous>, transform_indices = @transform_3, window_bounds = array<i64: 256, 48>}, {pipeline_mode = #tpu.pipeline_mode<synchronous>, transform_indices = @transform_4, window_bounds = array<i64: 1, 48>}, {transform_indices = @transform_5, window_bounds = array<i64: 8, 48>}]} {
    %c0 = arith.constant 0 : index
    %c0_0 = arith.constant 0 : index
    %0 = vector.load %arg1[%c0, %c0_0] : memref<8x240xf32, #tpu.memory_space<vmem>>, vector<8x240xf32>
    %1 = arith.truncf %0 : vector<8x240xf32> to vector<8x240xbf16>
    %c0_1 = arith.constant 0 : index
    %c0_2 = arith.constant 0 : index
    %2 = vector.load %arg2[%c0_1, %c0_2] : memref<240x256xbf16, #tpu.memory_space<vmem>>, vector<240x256xbf16>
    %cst = arith.constant dense<0.000000e+00> : vector<8x256xf32>
    %3 = tpu.matmul %1, %2, %cst {dimension_numbers = #tpu.dot_dimension_numbers<[1], [0], [0], [1], [0, 0, 1, 1], [], []>} : vector<8x240xbf16>, vector<240x256xbf16>, vector<8x256xf32> -> vector<8x256xf32>
    %c0_3 = arith.constant 0 : index
    %c0_4 = arith.constant 0 : index
    %4 = vector.load %arg3[%c0_3, %c0_4] : memref<1x256xf32, #tpu.memory_space<vmem>>, vector<1x256xf32>
    %5 = vector.broadcast %4 : vector<1x256xf32> to vector<8x256xf32>
    %6 = arith.addf %3, %5 : vector<8x256xf32>
    %cst_5 = arith.constant 0.000000e+00 : f32
    %7 = vector.broadcast %cst_5 : f32 to vector<8x256xf32>
    %8 = arith.maximumf %6, %7 : vector<8x256xf32>
    %9 = arith.truncf %8 : vector<8x256xf32> to vector<8x256xbf16>
    %c0_6 = arith.constant 0 : index
    %c0_7 = arith.constant 0 : index
    %10 = vector.load %arg4[%c0_6, %c0_7] : memref<256x48xbf16, #tpu.memory_space<vmem>>, vector<256x48xbf16>
    %cst_8 = arith.constant dense<0.000000e+00> : vector<8x48xf32>
    %11 = tpu.matmul %9, %10, %cst_8 {dimension_numbers = #tpu.dot_dimension_numbers<[1], [0], [0], [1], [0, 0, 1, 1], [], []>} : vector<8x256xbf16>, vector<256x48xbf16>, vector<8x48xf32> -> vector<8x48xf32>
    %c0_9 = arith.constant 0 : index
    %c0_10 = arith.constant 0 : index
    %12 = vector.load %arg5[%c0_9, %c0_10] : memref<1x48xf32, #tpu.memory_space<vmem>>, vector<1x48xf32>
    %13 = vector.broadcast %12 : vector<1x48xf32> to vector<8x48xf32>
    %14 = arith.addf %11, %13 : vector<8x48xf32>
    %c0_11 = arith.constant 0 : index
    %c0_12 = arith.constant 0 : index
    %15 = vector.load %arg6[%c0_11, %c0_12] : memref<8x48xf32, #tpu.memory_space<vmem>>, vector<8x48xf32>
    tpu.vector_store %arg6[%c0_11, %c0_12], %14 {strides = array<i32>} : memref<8x48xf32, #tpu.memory_space<vmem>>, vector<8x48xf32>,
    return
  }
  func.func @transform_0(%arg0: i32) -> (i32, i32) {
    %c0_i32 = arith.constant 0 : i32
    %c0_i32_0 = arith.constant 0 : i32
    return %arg0, %c0_i32 : i32, i32
  }
  func.func @transform_1(%arg0: i32) -> (i32, i32) {
    %c0_i32 = arith.constant 0 : i32
    %c0_i32_0 = arith.constant 0 : i32
    %c0_i32_1 = arith.constant 0 : i32
    return %c0_i32, %c0_i32_0 : i32, i32
  }
  func.func @transform_2(%arg0: i32) -> (i32, i32) {
    %c0_i32 = arith.constant 0 : i32
    %c0_i32_0 = arith.constant 0 : i32
    %c0_i32_1 = arith.constant 0 : i32
    return %c0_i32, %c0_i32_0 : i32, i32
  }
  func.func @transform_3(%arg0: i32) -> (i32, i32) {
    %c0_i32 = arith.constant 0 : i32
    %c0_i32_0 = arith.constant 0 : i32
    %c0_i32_1 = arith.constant 0 : i32
    return %c0_i32, %c0_i32_0 : i32, i32
  }
  func.func @transform_4(%arg0: i32) -> (i32, i32) {
    %c0_i32 = arith.constant 0 : i32
    %c0_i32_0 = arith.constant 0 : i32
    %c0_i32_1 = arith.constant 0 : i32
    return %c0_i32, %c0_i32_0 : i32, i32
  }
  func.func @transform_5(%arg0: i32) -> (i32, i32) {
    %c0_i32 = arith.constant 0 : i32
    %c0_i32_0 = arith.constant 0 : i32
    return %arg0, %c0_i32 : i32, i32
  }
}

</mosaic_0001>

<bundles_post_ra>
// kernel: mlp_forward.1
= control target key start
LH: loop header
LB: loop body
LE: loop exit
PB: predicated region body
PF: predicated region fallthrough
CT: control target
= control target key end

     0   :  { %vm218_vm0 = vcmask 916480   ;;  %s807_s0 = inlined_call_operand.vmem [shape: f32[8,240], index: 0, kind: input, shape index: {}]   ;;  %s808_s1 = inlined_call_operand.vmem [shape: bf16[240,256], index: 1, kind: input, shape index: {}]   ;;  %s809_s2 = inlined_call_operand.vmem [shape: f32[1,256], index: 2, kind: input, shape index: {}]   ;;  %s810_s3 = inlined_call_operand.vmem [shape: bf16[256,48], index: 3, kind: input, shape index: {}]   ;;  %s811_s4 = inlined_call_operand.vmem [shape: f32[1,48], index: 4, kind: input, shape index: {}]   ;;  %s812_s5 = inlined_call_operand.hbm [shape: f32[8,48], index: 5, kind: output, shape index: {}]  }
   0x1   :  { %v529_v0 = vld [vmem:[%s808_s1 + $0x4] ss:$8 sps:$4 sm:$0xff]   ;;  %v531_v1 = vld [vmem:[%s808_s1] ss:$8 sps:$4 sm:$0xff]   ;;  %v532_v2 = vld [vmem:[%s808_s1 + $0x14] ss:$8 sps:$4 sm:$0xff]  }
   0x2   :  { %222 = vmatprep.subr.bf16.mxu0 %v529_v0  ;;  %v534_v3 = vld [vmem:[%s808_s1 + $0x10] ss:$8 sps:$4 sm:$0xff]   ;;  %v535_v4 = vld [vmem:[%s808_s1 + $0x24] ss:$8 sps:$4 sm:$0xff]   ;;  %v537_v5 = vld [vmem:[%s808_s1 + $0x20] ss:$8 sps:$4 sm:$0xff]  }
   0x3   :  { %223 = vmatpush1.bf16.msra.mxu0 %v531_v1  ;;  %v538_v6 = vld [vmem:[%s808_s1 + $0x34] ss:$8 sps:$4 sm:$0xff]   ;;  %v540_v7 = vld [vmem:[%s808_s1 + $0x30] ss:$8 sps:$4 sm:$0xff]   ;;  %v541_v8 = vld [vmem:[%s808_s1 + $0x44] ss:$8 sps:$4 sm:$0xff]  }
   0x4   :  { %224 = vmatprep.subr.bf16.mxu0 %v532_v2  ;;  %v543_v9 = vld [vmem:[%s808_s1 + $0x40] ss:$8 sps:$4 sm:$0xff]   ;;  %v544_v10 = vld [vmem:[%s808_s1 + $0x54] ss:$8 sps:$4 sm:$0xff]   ;;  %v546_v11 = vld [vmem:[%s808_s1 + $0x50] ss:$8 sps:$4 sm:$0xff]  }
   0x5   :  { %v547_v12 = vld [vmem:[%s808_s1 + $0x64] ss:$8 sps:$4 sm:$0xff]   ;;  %v549_v14 = vld [vmem:[%s808_s1 + $0x60] ss:$8 sps:$4 sm:$0xff]   ;;  %v550_v19 = vld [vmem:[%s808_s1 + $0x74] ss:$8 sps:$4 sm:$0xff]  }
   0x6   :  { %v23_v13 = vld [vmem:[%s807_s0 + $0x8] sm:$0xff]  ;;  %v574_v16 = vld [vmem:[%s810_s3 + $0x40] sm:$0xff]   ;;  %v578_v21 = vld [vmem:[%s810_s3 + $0x50] sm:$0xff]  }
   0x7   :  { %225 = vmatpush1.bf16.msra.mxu0 %v534_v3  ;;  %v25_v15 = vpack.c.bf16 %v23_v13, %v23_v13  ;;  %v575_v17 = vld [vmem:[%s810_s3] sm:$0xff]   ;;  %v576_v18 = vld [vmem:[%s810_s3 + $0x48] sm:$0xff]   ;;  %506 = vmatprep.subr.bf16.mxu1 %v574_v16  ;;  %v552_v22 = vld [vmem:[%s808_s1 + $0x70] ss:$8 sps:$4 sm:$0xff]  }
   0x8   :  { %226 = vmatprep.subr.bf16.mxu0 %v535_v4  ;;  %507 = vmatpush3.bf16.msra.mxu1 %v575_v17  ;;  %v577_v20 = vld [vmem:[%s810_s3 + $0x8] sm:$0xff]   ;;  %v579_v25 = vld [vmem:[%s810_s3 + $0x10] sm:$0xff]   ;;  %v580_v26 = vld [vmem:[%s810_s3 + $0x58] sm:$0xff]  }
   0x9   :  { %488 = vmatprep.mubr.msk.bf16.mxu0 %vm218_vm0, %v25_v15  ;;  %508 = vmatprep.subr.bf16.mxu1 %v576_v18  ;;  %v553_v23 = vld [vmem:[%s808_s1 + $0x84] ss:$8 sps:$4 sm:$0xff]   ;;  %v555_v24 = vld [vmem:[%s808_s1 + $0x80] ss:$8 sps:$4 sm:$0xff]   ;;  %v556_v27 = vld [vmem:[%s808_s1 + $0x94] ss:$8 sps:$4 sm:$0xff]  }
   0xa   :  { %v581_v28 = vld [vmem:[%s810_s3 + $0x18] sm:$0xff]   ;;  %v582_v29 = vld [vmem:[%s810_s3 + $0x60] sm:$0xff]  }
   0xb   :  { %227 = vmatpush1.bf16.msra.mxu0 %v537_v5  ;;  %v558_v30 = vld [vmem:[%s808_s1 + $0x90] ss:$8 sps:$4 sm:$0xff]  }
   0xc   :  { %228 = vmatprep.subr.bf16.mxu0 %v538_v6  ;;  %509 = vmatpush3.bf16.msra.mxu1 %v577_v20 }
   0xd   :  { %510 = vmatprep.subr.bf16.mxu1 %v578_v21 }
   0xf   :  { %229 = vmatpush1.bf16.msra.mxu0 %v540_v7 }
  0x10   :  { %230 = vmatprep.subr.bf16.mxu0 %v541_v8  ;;  %511 = vmatpush3.bf16.msra.mxu1 %v579_v25 }
  0x11   :  { %512 = vmatprep.subr.bf16.mxu1 %v580_v26 }
  0x13   :  { %231 = vmatpush1.bf16.msra.mxu0 %v543_v9 }
  0x14   :  { %232 = vmatprep.subr.bf16.mxu0 %v544_v10 }
  0x17   :  { %233 = vmatpush1.bf16.msra.mxu0 %v546_v11 }
  0x18   :  { %234 = vmatprep.subr.bf16.mxu0 %v547_v12 }
  0x1b   :  { %235 = vmatpush1.bf16.msra.mxu0 %v549_v14 }
  0x1c   :  { %236 = vmatprep.subr.bf16.mxu0 %v550_v19 }
  0x1f   :  { %237 = vmatpush1.bf16.msra.mxu0 %v552_v22 }
  0x20   :  { %238 = vmatprep.subr.bf16.mxu0 %v553_v23 }
  0x23   :  { %239 = vmatpush1.bf16.msra.mxu0 %v555_v24 }
  0x24   :  { %10 = vsyncpa [#allocation3], 0  ;;  %240 = vmatprep.subr.bf16.mxu0 %v556_v27  ;;  %v559_v31 = vld [vmem:[%s808_s1 + $0xa4] ss:$8 sps:$4 sm:$0xff]   ;;  %513 = vmatpush3.bf16.msra.mxu1 %v581_v28  ;;  %v561_v34 = vld [vmem:[%s808_s1 + $0xa0] ss:$8 sps:$4 sm:$0xff]   ;;  %v58_v50 = vlaneseq }
  0x25   :  { %v583_v32 = vld [vmem:[%s810_s3 + $0x20] sm:$0xff]   ;;  %514 = vmatprep.subr.bf16.mxu1 %v582_v29  ;;  %v584_v33 = vld [vmem:[%s810_s3 + $0x68] sm:$0xff]   ;;  %v562_v35 = vld [vmem:[%s808_s1 + $0xb4] ss:$8 sps:$4 sm:$0xff]   ;;  %vm442_vm1 = vcmask 392192  }
  0x26   :  { %v585_v36 = vld [vmem:[%s810_s3 + $0x28] sm:$0xff]   ;;  %v564_v37 = vld [vmem:[%s808_s1 + $0xb0] ss:$8 sps:$4 sm:$0xff]   ;;  %v568_v40 = vld [vmem:[%s808_s1 + $0xd4] ss:$8 sps:$4 sm:$0xff]   ;;  %v59_v51 = vshrl.u32 %v58_v50, 7 }
  0x27   :  { %241 = vmatpush1.bf16.msra.mxu0 %v558_v30  ;;  %v565_v38 = vld [vmem:[%s808_s1 + $0xc4] ss:$8 sps:$4 sm:$0xff]   ;;  %v567_v39 = vld [vmem:[%s808_s1 + $0xc0] ss:$8 sps:$4 sm:$0xff]   ;;  %v570_v41 = vld [vmem:[%s808_s1 + $0xd0] ss:$8 sps:$4 sm:$0xff]  }
  0x28   :  { %242 = vmatprep.subr.bf16.mxu0 %v559_v31  ;;  %515 = vmatpush3.bf16.msra.mxu1 %v583_v32  ;;  %v571_v42 = vld [vmem:[%s808_s1 + $0xe4] ss:$8 sps:$4 sm:$0xff]   ;;  %v573_v43 = vld [vmem:[%s808_s1 + $0xe0] ss:$8 sps:$4 sm:$0xff]   ;;  %v586_v46 = vld [vmem:[%s810_s3 + $0x70] sm:$0xff]   ;;  %v60_v52 = vsub.s32 0, %v59_v51 }
  0x29   :  { %516 = vmatprep.subr.bf16.mxu1 %v584_v33  ;;  %v22_v44 = vld [vmem:[%s807_s0] sm:$0xff]  ;;  %v587_v47 = vld [vmem:[%s810_s3 + $0x30] sm:$0xff]   ;;  %v588_v48 = vld [vmem:[%s810_s3 + $0x78] sm:$0xff]   ;;  %v64_v54 = vsub.s32 1, %v59_v51 }
  0x2a   :  { %v24_v45 = vpack.c.bf16 %v22_v44, %v22_v44  ;;  %v589_v49 = vld [vmem:[%s810_s3 + $0x38] sm:$0xff]   ;;  %v56_v53 = vld [vmem:[%s809_s2] sm:$0x3]  ;;  %s614_s2 = smov [#allocation2]  }
  0x2b   :  { %243 = vmatpush1.bf16.msra.mxu0 %v561_v34  ;;  %v61_v55 = vrot.slane %v56_v53, %v60_v52  ;;  %v65_v56 = vrot.slane %v56_v53, %v64_v54  ;;  %v489_v4 = vld [vmem:[%s811_s4] ss:$0 sm:$0xff]  ;;  %s450_s15 = sshll.u32 %s614_s2, 4  ;;  %s451_s15 = int_to_ptr.vmem [resolvable:$true] %s450_s15 }
  0x2c   :  { %244 = vmatprep.subr.bf16.mxu0 %v562_v35  ;;  %517 = vmatpush3.bf16.msra.mxu1 %v585_v36  ;;  %s590_s16 = scalar_lea.vmem %s451_s15, 128  ;;  %p595_p1 = scmp.lt.s32.totalorder %s451_s15, %s451_s15 }
  0x2d   :  { %518 = vmatprep.subr.bf16.mxu1 %v586_v46  ;;  %p591_p0 = scmp.ne.s32.totalorder %s451_s15, %s590_s16  ;;  %p596_p2 = scmp.lt.s32.totalorder %s590_s16, %s590_s16 }
  0x2f   :  { %245 = vmatpush1.bf16.msra.mxu0 %v564_v37  ;;  %p597_p3 = por %p596_p2, %p595_p1 }
  0x30   :  { %246 = vmatprep.subr.bf16.mxu0 %v565_v38  ;;  %519 = vmatpush3.bf16.msra.mxu1 %v587_v47 }
  0x31   :  { %520 = vmatprep.subr.bf16.mxu1 %v588_v48  ;;  %p598_p4 = pnand %p597_p3, %p591_p0 }
  0x33   :  { %247 = vmatpush1.bf16.msra.mxu0 %v567_v39 }
  0x34   :  { %248 = vmatprep.subr.bf16.mxu0 %v568_v40  ;;  %521 = vmatpush3.bf16.msra.mxu1 %v589_v49 }
  0x37   :  { %249 = vmatpush1.bf16.msra.mxu0 %v570_v41 }
  0x38   :  { %250 = vmatprep.subr.bf16.mxu0 %v571_v42 }
  0x3b   :  { %251 = vmatpush1.bf16.msra.mxu0 %v573_v43 }
  0x3e   :  { %255 = vmatmul.mubr.bf16.vlgmr.msra.gmra.mrb[0].mxu0 %v24_v45 }
 0x111   :  { %v256_v57 = vpop.f32.mrb[0].mxu0 }
 0x112   :  { %v257_v58 = vadd.f32 %v256_v57, %v61_v55  ;;  %v258_v59 = vpop.f32.mrb[1].mxu0 }
 0x113   :  { %v259_v60 = vadd.f32 %v258_v59, %v65_v56  ;;  %v260_v61 = vpop.f32.mrb[2].mxu0 }
 0x114   :  { %v263_v62 = vmax.f32 %v257_v58, 0.0  ;;  %v261_v63 = vpop.f32.mrb[3].mxu0 }
 0x115   :  { %v264_v0 = vmax.f32 %v259_v60, 0.0 }
 0x116   :  { %v265_v2 = vpack.c.bf16 %v263_v62, %v263_v62 }
 0x117   :  { %v266_v1 = vpack.c.bf16 %v264_v0, %v264_v0 }
 0x119   :  { %434 = vmatprep.mubr.bf16.mxu1 %v266_v1 }
 0x11a   :  { %435 = vmatmul.mubr.bf16.vlgmr.msra.gmra.mrb[0].mxu1 %v265_v2 }
 0x1ed   :  { %v522_v3 = vpop.f32.mrb[0].mxu1 }
 0x1ee   :  { %v523_v5 = vpop.f32.mrb[1].mxu1 }
 0x1ef   :  { %v524_v6 = vadd.f32 %v523_v5, %v522_v3  ;;  %v525_v7 = vpop.f32.mrb[2].mxu1 }
 0x1f0   :  { %v526_v8 = vpop.f32.mrb[3].mxu1 }
 0x1f1   :  { %v437_v9 = vadd.f32 %v524_v6, %v489_v4 }
 0x1f3   :  { %443 = vst.msk [vmem:[#allocation2] sm:$0xff] %vm442_vm1, %v437_v9 }
 0x1f4   :  { %601 = shalt.err (!%p598_p4)
}
 0x1f5   :  { %s602_s4 = scalar_lea.hbm %s812_s5, 128 }
 0x1f6   :  { %p603_p5 = scmp.ne.s32.totalorder %s812_s5, %s602_s4  ;;  %p606_p6 = scmp.lt.u32.totalorder %s602_s4, %s812_s5 }
 0x1f8   :  { %p608_p7 = pnand %p606_p6, %p603_p5 }
 0x1fa   :  { %611 = shalt.err (!%p608_p7)
}
 0x1fb   :  { %453 = dma.vmem_to_hbm [thread:$0]  %s451_s15, 128, %s812_s5, [#allocation3]  }
 0x1fc   :  { %612 = dma.done.wait [#allocation3], 128  }
 0x1fd   :  { %613 = vsyncadd [#allocation3], 4294967168 }
 0x1fe   :  { %457 = vsyncpa [#allocation3], 1 }

</bundles_post_ra>
